<compile_context>
chip_gen: v5e
topology: v5e:2x2
jax: 0.10.0
libtpu: 0.0.40
codegen_flags: <defaults>
</compile_context>

<pallas_src>
import jax
import jax.numpy as jnp
import numpy as np
from jax.experimental import pallas as pl
from jax.experimental.pallas import tpu as pltpu


# ---------------------------------------------------------------------------
# static (shape-only) helper matrices, built host-side with numpy
# ---------------------------------------------------------------------------
def _interp_matrix(out_size: int, in_size: int) -> np.ndarray:
    """(out, in) 1-D linear-interpolation matrix, align_corners=True."""
    idx = np.arange(out_size, dtype=np.float64)
    if out_size > 1:
        src = idx * (in_size - 1) / (out_size - 1)
    else:
        src = np.zeros_like(idx)
    i0 = np.clip(np.floor(src).astype(np.int64), 0, in_size - 1)
    i1 = np.minimum(i0 + 1, in_size - 1)
    w1 = src - i0
    w0 = 1.0 - w1
    m = np.zeros((out_size, in_size), dtype=np.float64)
    np.add.at(m, (idx.astype(np.int64), i0), w0)
    np.add.at(m, (idx.astype(np.int64), i1), w1)
    return m.astype(np.float32)


def _shift_rows(size: int, delta: int) -> np.ndarray:
    """(size, size) S with (S @ X)[i, :] = X[i + delta, :] (zero out of range)."""
    m = np.zeros((size, size), dtype=np.float32)
    for i in range(size):
        j = i + delta
        if 0 <= j < size:
            m[i, j] = 1.0
    return m


# ---------------------------------------------------------------------------
# fused OutUp kernel:  up(x1) + matchUp(x2) + cat + DoubleConv + outUp
# all activations are 2-D:  rows = (n, h),  lanes = (channel, w)
# ---------------------------------------------------------------------------
def _out_up_kernel(x1_ref, x2_ref, k1_ref, k2_ref, a1_ref, a2_ref,
                   sy_ref, r1_ref, r2_ref, pavg1_ref, pavg2_ref,
                   g1_ref, be1_ref, g2_ref, be2_ref,
                   uout_ref, aout_ref, o_ref):
    f32 = jnp.float32

    def mm(a, b):
        return jnp.dot(a, b, preferred_element_type=f32)

    # --- bilinear up(x1) + matchUp(x2) + channel concat (as a sum of two
    #     lane-disjoint slabs): xcat is (N*H, C*W), 128 lanes wide -------------
    x2u = mm(a2_ref[...], mm(x2_ref[...], k2_ref[...]))   # channels [0, C2)
    x1u = mm(a1_ref[...], mm(x1_ref[...], k1_ref[...]))   # channels [C2, C)
    xcat = x2u + x1u

    def conv3x3(x, r_ref):
        # y = sum_ky (Sy_ky @ x) @ R_ky ; Sy_ky = per-image row shift (H pad),
        # R_ky = kron-packed weights folding the (kx, cin) -> cout lane mixing
        # (W pad handled inside the block structure of R_ky).  Conv bias is
        # omitted: it cancels against the training-mode BN mean subtraction.
        acc = mm(mm(sy_ref[0], x), r_ref[0])
        acc = acc + mm(mm(sy_ref[1], x), r_ref[1])
        acc = acc + mm(mm(sy_ref[2], x), r_ref[2])
        return acc

    def bn_relu(y, pavg_ref, g_ref, be_ref):
        # training-mode BatchNorm2d, single-pass stats (E[x], E[x^2]); Pavg
        # averages the W lanes of each channel block (stats over N, H, W).
        inv_rows = 1.0 / y.shape[0]
        m = jnp.sum(mm(y, pavg_ref[...]), axis=0, keepdims=True) * inv_rows
        q = jnp.sum(mm(y * y, pavg_ref[...]), axis=0, keepdims=True) * inv_rows
        var = q - m * m
        yh = (y - m) * jax.lax.rsqrt(var + 1e-5)
        return jnp.maximum(yh * g_ref[...] + be_ref[...], 0.0)

    y1 = bn_relu(conv3x3(xcat, r1_ref), pavg1_ref, g1_ref, be1_ref)   # (N*H, Cmid*W)
    y2 = bn_relu(conv3x3(y1, r2_ref), pavg2_ref, g2_ref, be2_ref)     # (N*H, Cout*W)

    # --- outUp: bilinear (sh, sw) = row interp matmul + per-channel col interp
    o_ref[...] = mm(aout_ref[...], mm(y2, uout_ref[...]))             # (N*Hout, Cout*Wout)


# ---------------------------------------------------------------------------
# wrapper: layout plumbing + static/packed-weight matrix preparation
# ---------------------------------------------------------------------------
def out_up_forward(params, x1, x2, out_up_scale=(1, 2)):
    wc1, b1, g1, be1, wc2, b2, g2, be2 = params
    del b1, b2  # cancelled exactly by training-mode BN mean subtraction

    n, c1, h1, w1_sp = x1.shape
    n2, c2, h2, w2_sp = x2.shape
    assert n == n2
    cin = c1 + c2
    cmid = wc1.shape[-1]
    cout = wc2.shape[-1]
    assert wc1.shape == (3, 3, cin, cmid) and wc2.shape == (3, 3, cmid, cout)

    # sizes after self.up (scale 2) and matchUp (to x1's size); F.pad diffs == 0
    H, W = 2 * h1, 2 * w1_sp
    Hout = int(H * out_up_scale[0])
    Wout = int(W * out_up_scale[1])

    # ---- static (shape-only) matrices -------------------------------------
    eyef = lambda k: np.eye(k, dtype=np.float32)
    bt1 = _interp_matrix(W, w1_sp).T                     # (w1, W)
    bt2 = _interp_matrix(W, w2_sp).T                     # (w2, W)
    k1 = np.zeros((c1 * w1_sp, cin * W), np.float32)     # x1 -> concat channels [c2, cin)
    k1[:, c2 * W:] = np.kron(eyef(c1), bt1)
    k2 = np.zeros((c2 * w2_sp, cin * W), np.float32)     # x2 -> concat channels [0, c2)
    k2[:, :c2 * W] = np.kron(eyef(c2), bt2)
    a1blk = np.kron(eyef(n), _interp_matrix(H, h1))      # (n*H, n*h1)
    a2blk = np.kron(eyef(n), _interp_matrix(H, h2))      # (n*H, n*h2)
    syblk = np.stack([np.kron(eyef(n), _shift_rows(H, ky - 1)) for ky in range(3)])
    dmat = np.stack([_shift_rows(W, kx - 1).T for kx in range(3)])       # (3, W, W)
    pavg1 = np.kron(eyef(cmid), np.full((W, W), 1.0 / W, np.float32))
    pavg2 = np.kron(eyef(cout), np.full((W, W), 1.0 / W, np.float32))
    uout = np.kron(eyef(cout), _interp_matrix(Wout, W).T)                # (cout*W, cout*Wout)
    aout = np.kron(eyef(n), _interp_matrix(Hout, H))                     # (n*Hout, n*H)

    # ---- parameter-dependent packed conv weights (tiny wrapper-side prep) ---
    d = jnp.asarray(dmat)
    r1 = jnp.einsum('yxio,xab->yiaob', wc1, d).reshape(3, cin * W, cmid * W)
    r2 = jnp.einsum('yxio,xab->yiaob', wc2, d).reshape(3, cmid * W, cout * W)
    g1l, be1l = jnp.repeat(g1, W)[None, :], jnp.repeat(be1, W)[None, :]
    g2l, be2l = jnp.repeat(g2, W)[None, :], jnp.repeat(be2, W)[None, :]

    # ---- input layout plumbing: NCHW -> (N*H, C*W) ---------------------------
    x1r = jnp.transpose(x1, (0, 2, 1, 3)).reshape(n * h1, c1 * w1_sp)
    x2r = jnp.transpose(x2, (0, 2, 1, 3)).reshape(n * h2, c2 * w2_sp)

    out2d = pl.pallas_call(
        _out_up_kernel,
        out_shape=jax.ShapeDtypeStruct((n * Hout, cout * Wout), jnp.float32),
        compiler_params=pltpu.CompilerParams(vmem_limit_bytes=32 * 1024 * 1024),
    )(x1r, x2r,
      jnp.asarray(k1), jnp.asarray(k2), jnp.asarray(a1blk), jnp.asarray(a2blk),
      jnp.asarray(syblk), r1, r2, jnp.asarray(pavg1), jnp.asarray(pavg2),
      g1l, be1l, g2l, be2l, jnp.asarray(uout), jnp.asarray(aout))

    # (N*Hout, Cout*Wout) -> (N, Cout, Hout, Wout)
    return jnp.transpose(out2d.reshape(n, Hout, cout, Wout), (0, 2, 1, 3))


def init_params(key, in_channels, out_channels):
    cmid = in_channels // 2
    k1, k2, k3, k4 = jax.random.split(key, 4)
    w1 = jax.random.normal(k1, (3, 3, in_channels, cmid), jnp.float32) * 0.1
    b1 = jax.random.normal(k2, (cmid,), jnp.float32) * 0.1        # unused: BN cancels it
    w2 = jax.random.normal(k3, (3, 3, cmid, out_channels), jnp.float32) * 0.1
    b2 = jax.random.normal(k4, (out_channels,), jnp.float32) * 0.1  # unused: BN cancels it
    g1 = jnp.ones((cmid,), jnp.float32)        # BatchNorm2d default init
    be1 = jnp.zeros((cmid,), jnp.float32)
    g2 = jnp.ones((out_channels,), jnp.float32)
    be2 = jnp.zeros((out_channels,), jnp.float32)
    return (w1, b1, g1, be1, w2, b2, g2, be2)


if __name__ == "__main__":
    key = jax.random.PRNGKey(0)
    kp, kx1, kx2 = jax.random.split(key, 3)

    in_channels, out_channels = 8, 4            # DoubleConv(8 -> 4, mid=4)
    params = init_params(kp, in_channels, out_channels)

    # x1: low-res features (C1=4), x2: skip connection (C2=4);  C1+C2 = 8
    x1 = jax.random.normal(kx1, (2, 4, 8, 8), jnp.float32)
    x2 = jax.random.normal(kx2, (2, 4, 14, 14), jnp.float32)

    out = out_up_forward(params, x1, x2)
    jax.block_until_ready(out)
    assert out.shape == (2, out_channels, 16, 32), out.shape
    assert bool(jnp.isfinite(out).all())
    print("KERNEL_OK")
</pallas_src>

<mosaic_0001>
module attributes {stable_mosaic.version = 11 : i64} {
  func.func @_out_up_kernel(%arg0: memref<16x32xf32, #tpu.memory_space<vmem>>, %arg1: memref<28x56xf32, #tpu.memory_space<vmem>>, %arg2: memref<32x128xf32, #tpu.memory_space<vmem>>, %arg3: memref<56x128xf32, #tpu.memory_space<vmem>>, %arg4: memref<32x16xf32, #tpu.memory_space<vmem>>, %arg5: memref<32x28xf32, #tpu.memory_space<vmem>>, %arg6: memref<3x32x32xf32, #tpu.memory_space<vmem>>, %arg7: memref<3x128x64xf32, #tpu.memory_space<vmem>>, %arg8: memref<3x64x64xf32, #tpu.memory_space<vmem>>, %arg9: memref<64x64xf32, #tpu.memory_space<vmem>>, %arg10: memref<64x64xf32, #tpu.memory_space<vmem>>, %arg11: memref<1x64xf32, #tpu.memory_space<vmem>>, %arg12: memref<1x64xf32, #tpu.memory_space<vmem>>, %arg13: memref<1x64xf32, #tpu.memory_space<vmem>>, %arg14: memref<1x64xf32, #tpu.memory_space<vmem>>, %arg15: memref<64x128xf32, #tpu.memory_space<vmem>>, %arg16: memref<32x32xf32, #tpu.memory_space<vmem>>, %arg17: memref<32x128xf32, #tpu.memory_space<vmem>>) attributes {dimension_semantics = [], scalar_prefetch = 0 : i64, scratch_operands = 0 : i64, tpu.core_type = #tpu.core_type<tc>} {
    %c0 = arith.constant 0 : index
    %c0_0 = arith.constant 0 : index
    %0 = vector.load %arg5[%c0, %c0_0] : memref<32x28xf32, #tpu.memory_space<vmem>>, vector<32x28xf32>
    %c0_1 = arith.constant 0 : index
    %c0_2 = arith.constant 0 : index
    %1 = vector.load %arg1[%c0_1, %c0_2] : memref<28x56xf32, #tpu.memory_space<vmem>>, vector<28x56xf32>
    %c0_3 = arith.constant 0 : index
    %c0_4 = arith.constant 0 : index
    %2 = vector.load %arg3[%c0_3, %c0_4] : memref<56x128xf32, #tpu.memory_space<vmem>>, vector<56x128xf32>
    %cst = arith.constant dense<0.000000e+00> : vector<28x128xf32>
    %3 = tpu.matmul %1, %2, %cst {dimension_numbers = #tpu.dot_dimension_numbers<[1], [0], [0], [1], [0, 0, 1, 1], [], []>} : vector<28x56xf32>, vector<56x128xf32>, vector<28x128xf32> -> vector<28x128xf32>
    %cst_5 = arith.constant dense<0.000000e+00> : vector<32x128xf32>
    %4 = tpu.matmul %0, %3, %cst_5 {dimension_numbers = #tpu.dot_dimension_numbers<[1], [0], [0], [1], [0, 0, 1, 1], [], []>} : vector<32x28xf32>, vector<28x128xf32>, vector<32x128xf32> -> vector<32x128xf32>
    %c0_6 = arith.constant 0 : index
    %c0_7 = arith.constant 0 : index
    %5 = vector.load %arg4[%c0_6, %c0_7] : memref<32x16xf32, #tpu.memory_space<vmem>>, vector<32x16xf32>
    %c0_8 = arith.constant 0 : index
    %c0_9 = arith.constant 0 : index
    %6 = vector.load %arg0[%c0_8, %c0_9] : memref<16x32xf32, #tpu.memory_space<vmem>>, vector<16x32xf32>
    %c0_10 = arith.constant 0 : index
    %c0_11 = arith.constant 0 : index
    %7 = vector.load %arg2[%c0_10, %c0_11] : memref<32x128xf32, #tpu.memory_space<vmem>>, vector<32x128xf32>
    %cst_12 = arith.constant dense<0.000000e+00> : vector<16x128xf32>
    %8 = tpu.matmul %6, %7, %cst_12 {dimension_numbers = #tpu.dot_dimension_numbers<[1], [0], [0], [1], [0, 0, 1, 1], [], []>} : vector<16x32xf32>, vector<32x128xf32>, vector<16x128xf32> -> vector<16x128xf32>
    %cst_13 = arith.constant dense<0.000000e+00> : vector<32x128xf32>
    %9 = tpu.matmul %5, %8, %cst_13 {dimension_numbers = #tpu.dot_dimension_numbers<[1], [0], [0], [1], [0, 0, 1, 1], [], []>} : vector<32x16xf32>, vector<16x128xf32>, vector<32x128xf32> -> vector<32x128xf32>
    %10 = arith.addf %4, %9 : vector<32x128xf32>
    %c0_14 = arith.constant 0 : index
    %c0_15 = arith.constant 0 : index
    %c0_16 = arith.constant 0 : index
    %11 = vector.load %arg6[%c0_14, %c0_15, %c0_16] : memref<3x32x32xf32, #tpu.memory_space<vmem>>, vector<1x32x32xf32>
    %12 = vector.shape_cast %11 : vector<1x32x32xf32> to vector<32x32xf32>
    %cst_17 = arith.constant dense<0.000000e+00> : vector<32x128xf32>
    %13 = tpu.matmul %12, %10, %cst_17 {dimension_numbers = #tpu.dot_dimension_numbers<[1], [0], [0], [1], [0, 0, 1, 1], [], []>} : vector<32x32xf32>, vector<32x128xf32>, vector<32x128xf32> -> vector<32x128xf32>
    %c0_18 = arith.constant 0 : index
    %c0_19 = arith.constant 0 : index
    %c0_20 = arith.constant 0 : index
    %14 = vector.load %arg7[%c0_18, %c0_19, %c0_20] : memref<3x128x64xf32, #tpu.memory_space<vmem>>, vector<1x128x64xf32>
    %15 = vector.shape_cast %14 : vector<1x128x64xf32> to vector<128x64xf32>
    %cst_21 = arith.constant dense<0.000000e+00> : vector<32x64xf32>
    %16 = tpu.matmul %13, %15, %cst_21 {dimension_numbers = #tpu.dot_dimension_numbers<[1], [0], [0], [1], [0, 0, 1, 1], [], []>} : vector<32x128xf32>, vector<128x64xf32>, vector<32x64xf32> -> vector<32x64xf32>
    %c1 = arith.constant 1 : index
    %c0_22 = arith.constant 0 : index
    %c0_23 = arith.constant 0 : index
    %17 = vector.load %arg6[%c1, %c0_22, %c0_23] : memref<3x32x32xf32, #tpu.memory_space<vmem>>, vector<1x32x32xf32>
    %18 = vector.shape_cast %17 : vector<1x32x32xf32> to vector<32x32xf32>
    %cst_24 = arith.constant dense<0.000000e+00> : vector<32x128xf32>
    %19 = tpu.matmul %18, %10, %cst_24 {dimension_numbers = #tpu.dot_dimension_numbers<[1], [0], [0], [1], [0, 0, 1, 1], [], []>} : vector<32x32xf32>, vector<32x128xf32>, vector<32x128xf32> -> vector<32x128xf32>
    %c1_25 = arith.constant 1 : index
    %c0_26 = arith.constant 0 : index
    %c0_27 = arith.constant 0 : index
    %20 = vector.load %arg7[%c1_25, %c0_26, %c0_27] : memref<3x128x64xf32, #tpu.memory_space<vmem>>, vector<1x128x64xf32>
    %21 = vector.shape_cast %20 : vector<1x128x64xf32> to vector<128x64xf32>
    %cst_28 = arith.constant dense<0.000000e+00> : vector<32x64xf32>
    %22 = tpu.matmul %19, %21, %cst_28 {dimension_numbers = #tpu.dot_dimension_numbers<[1], [0], [0], [1], [0, 0, 1, 1], [], []>} : vector<32x128xf32>, vector<128x64xf32>, vector<32x64xf32> -> vector<32x64xf32>
    %23 = arith.addf %16, %22 : vector<32x64xf32>
    %c2 = arith.constant 2 : index
    %c0_29 = arith.constant 0 : index
    %c0_30 = arith.constant 0 : index
    %24 = vector.load %arg6[%c2, %c0_29, %c0_30] : memref<3x32x32xf32, #tpu.memory_space<vmem>>, vector<1x32x32xf32>
    %25 = vector.shape_cast %24 : vector<1x32x32xf32> to vector<32x32xf32>
    %cst_31 = arith.constant dense<0.000000e+00> : vector<32x128xf32>
    %26 = tpu.matmul %25, %10, %cst_31 {dimension_numbers = #tpu.dot_dimension_numbers<[1], [0], [0], [1], [0, 0, 1, 1], [], []>} : vector<32x32xf32>, vector<32x128xf32>, vector<32x128xf32> -> vector<32x128xf32>
    %c2_32 = arith.constant 2 : index
    %c0_33 = arith.constant 0 : index
    %c0_34 = arith.constant 0 : index
    %27 = vector.load %arg7[%c2_32, %c0_33, %c0_34] : memref<3x128x64xf32, #tpu.memory_space<vmem>>, vector<1x128x64xf32>
    %28 = vector.shape_cast %27 : vector<1x128x64xf32> to vector<128x64xf32>
    %cst_35 = arith.constant dense<0.000000e+00> : vector<32x64xf32>
    %29 = tpu.matmul %26, %28, %cst_35 {dimension_numbers = #tpu.dot_dimension_numbers<[1], [0], [0], [1], [0, 0, 1, 1], [], []>} : vector<32x128xf32>, vector<128x64xf32>, vector<32x64xf32> -> vector<32x64xf32>
    %30 = arith.addf %23, %29 : vector<32x64xf32>
    %c0_36 = arith.constant 0 : index
    %c0_37 = arith.constant 0 : index
    %31 = vector.load %arg9[%c0_36, %c0_37] : memref<64x64xf32, #tpu.memory_space<vmem>>, vector<64x64xf32>
    %cst_38 = arith.constant dense<0.000000e+00> : vector<32x64xf32>
    %32 = tpu.matmul %30, %31, %cst_38 {dimension_numbers = #tpu.dot_dimension_numbers<[1], [0], [0], [1], [0, 0, 1, 1], [], []>} : vector<32x64xf32>, vector<64x64xf32>, vector<32x64xf32> -> vector<32x64xf32>
    %cst_39 = arith.constant dense<0.000000e+00> : vector<64xf32>
    %33 = vector.multi_reduction <add>, %32, %cst_39 [0] : vector<32x64xf32> to vector<64xf32>
    %34 = vector.shape_cast %33 : vector<64xf32> to vector<1x64xf32>
    %cst_40 = arith.constant 3.125000e-02 : f32
    %35 = vector.broadcast %cst_40 : f32 to vector<1x64xf32>
    %36 = arith.mulf %34, %35 : vector<1x64xf32>
    %37 = arith.mulf %30, %30 : vector<32x64xf32>
    %c0_41 = arith.constant 0 : index
    %c0_42 = arith.constant 0 : index
    %38 = vector.load %arg9[%c0_41, %c0_42] : memref<64x64xf32, #tpu.memory_space<vmem>>, vector<64x64xf32>
    %cst_43 = arith.constant dense<0.000000e+00> : vector<32x64xf32>
    %39 = tpu.matmul %37, %38, %cst_43 {dimension_numbers = #tpu.dot_dimension_numbers<[1], [0], [0], [1], [0, 0, 1, 1], [], []>} : vector<32x64xf32>, vector<64x64xf32>, vector<32x64xf32> -> vector<32x64xf32>
    %cst_44 = arith.constant dense<0.000000e+00> : vector<64xf32>
    %40 = vector.multi_reduction <add>, %39, %cst_44 [0] : vector<32x64xf32> to vector<64xf32>
    %41 = vector.shape_cast %40 : vector<64xf32> to vector<1x64xf32>
    %cst_45 = arith.constant 3.125000e-02 : f32
    %42 = vector.broadcast %cst_45 : f32 to vector<1x64xf32>
    %43 = arith.mulf %41, %42 : vector<1x64xf32>
    %44 = arith.mulf %36, %36 : vector<1x64xf32>
    %45 = arith.subf %43, %44 : vector<1x64xf32>
    %46 = vector.broadcast %36 : vector<1x64xf32> to vector<32x64xf32>
    %47 = arith.subf %30, %46 : vector<32x64xf32>
    %cst_46 = arith.constant 9.99999974E-6 : f32
    %48 = vector.broadcast %cst_46 : f32 to vector<1x64xf32>
    %49 = arith.addf %45, %48 : vector<1x64xf32>
    %50 = math.rsqrt %49 : vector<1x64xf32>
    %51 = vector.broadcast %50 : vector<1x64xf32> to vector<32x64xf32>
    %52 = arith.mulf %47, %51 : vector<32x64xf32>
    %c0_47 = arith.constant 0 : index
    %c0_48 = arith.constant 0 : index
    %53 = vector.load %arg11[%c0_47, %c0_48] : memref<1x64xf32, #tpu.memory_space<vmem>>, vector<1x64xf32>
    %54 = vector.broadcast %53 : vector<1x64xf32> to vector<32x64xf32>
    %55 = arith.mulf %52, %54 : vector<32x64xf32>
    %c0_49 = arith.constant 0 : index
    %c0_50 = arith.constant 0 : index
    %56 = vector.load %arg12[%c0_49, %c0_50] : memref<1x64xf32, #tpu.memory_space<vmem>>, vector<1x64xf32>
    %57 = vector.broadcast %56 : vector<1x64xf32> to vector<32x64xf32>
    %58 = arith.addf %55, %57 : vector<32x64xf32>
    %cst_51 = arith.constant 0.000000e+00 : f32
    %59 = vector.broadcast %cst_51 : f32 to vector<32x64xf32>
    %60 = arith.maximumf %58, %59 : vector<32x64xf32>
    %c0_52 = arith.constant 0 : index
    %c0_53 = arith.constant 0 : index
    %c0_54 = arith.constant 0 : index
    %61 = vector.load %arg6[%c0_52, %c0_53, %c0_54] : memref<3x32x32xf32, #tpu.memory_space<vmem>>, vector<1x32x32xf32>
    %62 = vector.shape_cast %61 : vector<1x32x32xf32> to vector<32x32xf32>
    %cst_55 = arith.constant dense<0.000000e+00> : vector<32x64xf32>
    %63 = tpu.matmul %62, %60, %cst_55 {dimension_numbers = #tpu.dot_dimension_numbers<[1], [0], [0], [1], [0, 0, 1, 1], [], []>} : vector<32x32xf32>, vector<32x64xf32>, vector<32x64xf32> -> vector<32x64xf32>
    %c0_56 = arith.constant 0 : index
    %c0_57 = arith.constant 0 : index
    %c0_58 = arith.constant 0 : index
    %64 = vector.load %arg8[%c0_56, %c0_57, %c0_58] : memref<3x64x64xf32, #tpu.memory_space<vmem>>, vector<1x64x64xf32>
    %65 = vector.shape_cast %64 : vector<1x64x64xf32> to vector<64x64xf32>
    %cst_59 = arith.constant dense<0.000000e+00> : vector<32x64xf32>
    %66 = tpu.matmul %63, %65, %cst_59 {dimension_numbers = #tpu.dot_dimension_numbers<[1], [0], [0], [1], [0, 0, 1, 1], [], []>} : vector<32x64xf32>, vector<64x64xf32>, vector<32x64xf32> -> vector<32x64xf32>
    %c1_60 = arith.constant 1 : index
    %c0_61 = arith.constant 0 : index
    %c0_62 = arith.constant 0 : index
    %67 = vector.load %arg6[%c1_60, %c0_61, %c0_62] : memref<3x32x32xf32, #tpu.memory_space<vmem>>, vector<1x32x32xf32>
    %68 = vector.shape_cast %67 : vector<1x32x32xf32> to vector<32x32xf32>
    %cst_63 = arith.constant dense<0.000000e+00> : vector<32x64xf32>
    %69 = tpu.matmul %68, %60, %cst_63 {dimension_numbers = #tpu.dot_dimension_numbers<[1], [0], [0], [1], [0, 0, 1, 1], [], []>} : vector<32x32xf32>, vector<32x64xf32>, vector<32x64xf32> -> vector<32x64xf32>
    %c1_64 = arith.constant 1 : index
    %c0_65 = arith.constant 0 : index
    %c0_66 = arith.constant 0 : index
    %70 = vector.load %arg8[%c1_64, %c0_65, %c0_66] : memref<3x64x64xf32, #tpu.memory_space<vmem>>, vector<1x64x64xf32>
    %71 = vector.shape_cast %70 : vector<1x64x64xf32> to vector<64x64xf32>
    %cst_67 = arith.constant dense<0.000000e+00> : vector<32x64xf32>
    %72 = tpu.matmul %69, %71, %cst_67 {dimension_numbers = #tpu.dot_dimension_numbers<[1], [0], [0], [1], [0, 0, 1, 1], [], []>} : vector<32x64xf32>, vector<64x64xf32>, vector<32x64xf32> -> vector<32x64xf32>
    %73 = arith.addf %66, %72 : vector<32x64xf32>
    %c2_68 = arith.constant 2 : index
    %c0_69 = arith.constant 0 : index
    %c0_70 = arith.constant 0 : index
    %74 = vector.load %arg6[%c2_68, %c0_69, %c0_70] : memref<3x32x32xf32, #tpu.memory_space<vmem>>, vector<1x32x32xf32>
    %75 = vector.shape_cast %74 : vector<1x32x32xf32> to vector<32x32xf32>
    %cst_71 = arith.constant dense<0.000000e+00> : vector<32x64xf32>
    %76 = tpu.matmul %75, %60, %cst_71 {dimension_numbers = #tpu.dot_dimension_numbers<[1], [0], [0], [1], [0, 0, 1, 1], [], []>} : vector<32x32xf32>, vector<32x64xf32>, vector<32x64xf32> -> vector<32x64xf32>
    %c2_72 = arith.constant 2 : index
    %c0_73 = arith.constant 0 : index
    %c0_74 = arith.constant 0 : index
    %77 = vector.load %arg8[%c2_72, %c0_73, %c0_74] : memref<3x64x64xf32, #tpu.memory_space<vmem>>, vector<1x64x64xf32>
    %78 = vector.shape_cast %77 : vector<1x64x64xf32> to vector<64x64xf32>
    %cst_75 = arith.constant dense<0.000000e+00> : vector<32x64xf32>
    %79 = tpu.matmul %76, %78, %cst_75 {dimension_numbers = #tpu.dot_dimension_numbers<[1], [0], [0], [1], [0, 0, 1, 1], [], []>} : vector<32x64xf32>, vector<64x64xf32>, vector<32x64xf32> -> vector<32x64xf32>
    %80 = arith.addf %73, %79 : vector<32x64xf32>
    %c0_76 = arith.constant 0 : index
    %c0_77 = arith.constant 0 : index
    %81 = vector.load %arg10[%c0_76, %c0_77] : memref<64x64xf32, #tpu.memory_space<vmem>>, vector<64x64xf32>
    %cst_78 = arith.constant dense<0.000000e+00> : vector<32x64xf32>
    %82 = tpu.matmul %80, %81, %cst_78 {dimension_numbers = #tpu.dot_dimension_numbers<[1], [0], [0], [1], [0, 0, 1, 1], [], []>} : vector<32x64xf32>, vector<64x64xf32>, vector<32x64xf32> -> vector<32x64xf32>
    %cst_79 = arith.constant dense<0.000000e+00> : vector<64xf32>
    %83 = vector.multi_reduction <add>, %82, %cst_79 [0] : vector<32x64xf32> to vector<64xf32>
    %84 = vector.shape_cast %83 : vector<64xf32> to vector<1x64xf32>
    %cst_80 = arith.constant 3.125000e-02 : f32
    %85 = vector.broadcast %cst_80 : f32 to vector<1x64xf32>
    %86 = arith.mulf %84, %85 : vector<1x64xf32>
    %87 = arith.mulf %80, %80 : vector<32x64xf32>
    %c0_81 = arith.constant 0 : index
    %c0_82 = arith.constant 0 : index
    %88 = vector.load %arg10[%c0_81, %c0_82] : memref<64x64xf32, #tpu.memory_space<vmem>>, vector<64x64xf32>
    %cst_83 = arith.constant dense<0.000000e+00> : vector<32x64xf32>
    %89 = tpu.matmul %87, %88, %cst_83 {dimension_numbers = #tpu.dot_dimension_numbers<[1], [0], [0], [1], [0, 0, 1, 1], [], []>} : vector<32x64xf32>, vector<64x64xf32>, vector<32x64xf32> -> vector<32x64xf32>
    %cst_84 = arith.constant dense<0.000000e+00> : vector<64xf32>
    %90 = vector.multi_reduction <add>, %89, %cst_84 [0] : vector<32x64xf32> to vector<64xf32>
    %91 = vector.shape_cast %90 : vector<64xf32> to vector<1x64xf32>
    %cst_85 = arith.constant 3.125000e-02 : f32
    %92 = vector.broadcast %cst_85 : f32 to vector<1x64xf32>
    %93 = arith.mulf %91, %92 : vector<1x64xf32>
    %94 = arith.mulf %86, %86 : vector<1x64xf32>
    %95 = arith.subf %93, %94 : vector<1x64xf32>
    %96 = vector.broadcast %86 : vector<1x64xf32> to vector<32x64xf32>
    %97 = arith.subf %80, %96 : vector<32x64xf32>
    %cst_86 = arith.constant 9.99999974E-6 : f32
    %98 = vector.broadcast %cst_86 : f32 to vector<1x64xf32>
    %99 = arith.addf %95, %98 : vector<1x64xf32>
    %100 = math.rsqrt %99 : vector<1x64xf32>
    %101 = vector.broadcast %100 : vector<1x64xf32> to vector<32x64xf32>
    %102 = arith.mulf %97, %101 : vector<32x64xf32>
    %c0_87 = arith.constant 0 : index
    %c0_88 = arith.constant 0 : index
    %103 = vector.load %arg13[%c0_87, %c0_88] : memref<1x64xf32, #tpu.memory_space<vmem>>, vector<1x64xf32>
    %104 = vector.broadcast %103 : vector<1x64xf32> to vector<32x64xf32>
    %105 = arith.mulf %102, %104 : vector<32x64xf32>
    %c0_89 = arith.constant 0 : index
    %c0_90 = arith.constant 0 : index
    %106 = vector.load %arg14[%c0_89, %c0_90] : memref<1x64xf32, #tpu.memory_space<vmem>>, vector<1x64xf32>
    %107 = vector.broadcast %106 : vector<1x64xf32> to vector<32x64xf32>
    %108 = arith.addf %105, %107 : vector<32x64xf32>
    %cst_91 = arith.constant 0.000000e+00 : f32
    %109 = vector.broadcast %cst_91 : f32 to vector<32x64xf32>
    %110 = arith.maximumf %108, %109 : vector<32x64xf32>
    %c0_92 = arith.constant 0 : index
    %c0_93 = arith.constant 0 : index
    %111 = vector.load %arg16[%c0_92, %c0_93] : memref<32x32xf32, #tpu.memory_space<vmem>>, vector<32x32xf32>
    %c0_94 = arith.constant 0 : index
    %c0_95 = arith.constant 0 : index
    %112 = vector.load %arg15[%c0_94, %c0_95] : memref<64x128xf32, #tpu.memory_space<vmem>>, vector<64x128xf32>
    %cst_96 = arith.constant dense<0.000000e+00> : vector<32x128xf32>
    %113 = tpu.matmul %110, %112, %cst_96 {dimension_numbers = #tpu.dot_dimension_numbers<[1], [0], [0], [1], [0, 0, 1, 1], [], []>} : vector<32x64xf32>, vector<64x128xf32>, vector<32x128xf32> -> vector<32x128xf32>
    %cst_97 = arith.constant dense<0.000000e+00> : vector<32x128xf32>
    %114 = tpu.matmul %111, %113, %cst_97 {dimension_numbers = #tpu.dot_dimension_numbers<[1], [0], [0], [1], [0, 0, 1, 1], [], []>} : vector<32x32xf32>, vector<32x128xf32>, vector<32x128xf32> -> vector<32x128xf32>
    %c0_98 = arith.constant 0 : index
    %c0_99 = arith.constant 0 : index
    %115 = vector.load %arg17[%c0_98, %c0_99] : memref<32x128xf32, #tpu.memory_space<vmem>>, vector<32x128xf32>
    tpu.vector_store %arg17[%c0_98, %c0_99], %114 {strides = array<i32>} : memref<32x128xf32, #tpu.memory_space<vmem>>, vector<32x128xf32>,
    return
  }
}

</mosaic_0001>

<bundles_post_ra>
// kernel: tpu_custom_call.1
= control target key start
LH: loop header
LB: loop body
LE: loop exit
PB: predicated region body
PF: predicated region fallthrough
CT: control target
= control target key end

     0   :  { %s2147_s0 = inlined_call_operand.hbm [shape: f32[16,32], index: 0, kind: input, shape index: {}]   ;;  %s2148_s1 = inlined_call_operand.vmem [shape: f32[28,56], index: 1, kind: input, shape index: {}]   ;;  %s2149_s2 = inlined_call_operand.vmem [shape: f32[32,128], index: 2, kind: input, shape index: {}]   ;;  %s2150_s3 = inlined_call_operand.vmem [shape: f32[56,128], index: 3, kind: input, shape index: {}]   ;;  %s2151_s4 = inlined_call_operand.vmem [shape: f32[32,16], index: 4, kind: input, shape index: {}]   ;;  %s2152_s5 = inlined_call_operand.hbm [shape: f32[32,28], index: 5, kind: input, shape index: {}]   ;;  %s2153_s6 = inlined_call_operand.vmem [shape: f32[3,32,32], index: 6, kind: input, shape index: {}]   ;;  %s2154_s7 = inlined_call_operand.vmem [shape: f32[3,128,64], index: 7, kind: input, shape index: {}]   ;;  %s2155_s8 = inlined_call_operand.vmem [shape: f32[3,64,64], index: 8, kind: input, shape index: {}]   ;;  %s2156_s9 = inlined_call_operand.vmem [shape: f32[64,64], index: 9, kind: input, shape index: {}]   ;;  %s2157_s10 = inlined_call_operand.vmem [shape: f32[64,64], index: 10, kind: input, shape index: {}]   ;;  %s2158_s11 = inlined_call_operand.vmem [shape: f32[1,64], index: 11, kind: input, shape index: {}]   ;;  %s2159_s12 = inlined_call_operand.vmem [shape: f32[1,64], index: 12, kind: input, shape index: {}]   ;;  %s2160_s13 = inlined_call_operand.vmem [shape: f32[1,64], index: 13, kind: input, shape index: {}]   ;;  %s2161_s14 = inlined_call_operand.vmem [shape: f32[1,64], index: 14, kind: input, shape index: {}]   ;;  %s2162_s15 = inlined_call_operand.vmem [shape: f32[64,128], index: 15, kind: input, shape index: {}]   ;;  %s2163_s16 = inlined_call_operand.vmem [shape: f32[32,32], index: 16, kind: input, shape index: {}]   ;;  %s2164_s17 = inlined_call_operand.hbm [shape: f32[32,128], index: 17, kind: output, shape index: {}]  }
   0x1   :  { %2166 = sst [smem:[#allocation11_spill]] %s2147_s0 }
   0x2   :  { %2167 = sst [smem:[#allocation12_spill]] %s2148_s1 }
   0x3   :  { %22 = vsyncpa [#allocation3], 0 }
   0x4   :  { %23 = vsyncpa [#allocation6], 0 }
   0x5   :  { %24 = vsyncpa [#allocation4], 0  ;;  %s2168_s26 = sld [smem:[#allocation11_spill]]  ;;  %s1461_s28 = smov [#allocation2]  }
   0x6   :  { %s31_s29 = sshll.u32 %s1461_s28, 4  ;;  %s50_s18 = sshll.u32 %s2152_s5, 4  ;;  %s32_s29 = int_to_ptr.vmem [resolvable:$true] %s31_s29  ;;  %s51_s18 = int_to_ptr.hbm [resolvable:$true] %s50_s18 }
   0x7   :  { %s1462_s19 = smov 128   ;;  %s1463_s1 = smov 8  }
   0x8   :  { %s1464_s20 = smov [#allocation5]  }
   0x9   :  { %s52_s21 = sshll.u32 %s1464_s20, 4  ;;  %s53_s21 = int_to_ptr.vmem [resolvable:$true] %s52_s21 }
   0xa   :  { %58 = dma.hbm_to_vmem [thread:$0]  %s51_s18, 512, %s53_s21, [#allocation6], %s1462_s19, %s1462_s19, %s1463_s1  }
   0xb   :  { %s29_s27 = sshll.u32 %s2168_s26, 4  ;;  %s30_s27 = int_to_ptr.hbm [resolvable:$true] %s29_s27 }
   0xc   :  { %37 = dma.hbm_to_vmem [thread:$0]  %s30_s27, 256, %s32_s29, [#allocation3], %s1462_s19, %s1462_s19, %s1463_s1  }
   0xd   :  { %1455 = dma.done.wait [#allocation3], 256  }
   0xe   :  { %1456 = vsyncadd [#allocation3], 4294967040 }
   0xf   :  { %1457 = dma.done.wait [#allocation6], 512  }
  0x10   :  { %1458 = vsyncadd [#allocation6], 4294966784  ;;  %v103_v0 = vld [vmem:[%s2150_s3 + $0x30] sm:$0xff]  ;;  %v155_v1 = vld [vmem:[%s2149_s2 + $0x18] sm:$0xff]  ;;  %vm156_vm0 = vcmask 261120   ;;  %s2169_s0 = sld [smem:[#allocation12_spill]] }
  0x11   :  { %v102_v2 = vld [vmem:[%s2150_s3 + $0x28] sm:$0xff]  ;;  %126 = vmatpush.msra.mxu0 %v103_v0  ;;  %175 = vmatpush.msra.mxu1 %v155_v1  ;;  %v154_v3 = vld [vmem:[%s2149_s2 + $0x10] sm:$0xff]  ;;  %v101_v4 = vld [vmem:[%s2150_s3 + $0x20] sm:$0xff]  ;;  %vm104_vm1 = vcmask 457728   ;;  %vm186_vm2 = vcmask 130048   ;;  %vm241_vm3 = vcmask 1043456  }
  0x12   :  { %v153_v5 = vld [vmem:[%s2149_s2 + $0x8] sm:$0xff]  ;;  %v100_v6 = vld [vmem:[%s2150_s3 + $0x18] sm:$0xff]  ;;  %v152_v7 = vld [vmem:[%s2149_s2] sm:$0xff]  ;;  %vm228_vm4 = vcmask 228352   ;;  %vm560_vm5 = vcmask 523264   ;;  %s1465_s26 = smov [#allocation7]  }
  0x13   :  { %127 = vmatpush.msra.mxu0 %v102_v2  ;;  %176 = vmatpush.msra.mxu1 %v154_v3  ;;  %v150_v8 = vld [vmem:[#allocation2] sm:$0xff]  ;;  %v99_v9 = vld [vmem:[%s2150_s3 + $0x10] sm:$0xff]  ;;  %v98_v10 = vld [vmem:[%s2150_s3 + $0x8] sm:$0xff]  ;;  %s1221_s27 = sshll.u32 %s1465_s26, 4  ;;  %s1222_s27 = int_to_ptr.vmem [resolvable:$true] %s1221_s27 }
  0x14   :  { %v97_v11 = vld [vmem:[%s2150_s3] sm:$0xff]  ;;  %v151_v13 = vld [vmem:[#allocation2 + $0x8] sm:$0xff]  ;;  %v148_v20 = vld [vmem:[%s2151_s4 + $0x10] sm:$0xff] }
  0x15   :  { %128 = vmatpush.msra.mxu0 %v101_v4  ;;  %177 = vmatpush.msra.mxu1 %v153_v5  ;;  %v146_v21 = vld [vmem:[%s2151_s4] sm:$0xff]  ;;  %v149_v23 = vld [vmem:[%s2151_s4 + $0x18] sm:$0xff]  ;;  %v147_v24 = vld [vmem:[%s2151_s4 + $0x8] sm:$0xff] }
  0x16   :  { %v93_v12 = vld [vmem:[%s2169_s0] sm:$0xff]  ;;  %v94_v14 = vld [vmem:[%s2169_s0 + $0x8] sm:$0xff]  ;;  %v95_v15 = vld [vmem:[%s2169_s0 + $0x10] sm:$0xff] }
  0x17   :  { %129 = vmatpush.msra.mxu0 %v100_v6  ;;  %178 = vmatpush.msra.mxu1 %v152_v7  ;;  %v96_v16 = vld [vmem:[%s2169_s0 + $0x18] sm:$0xf]  ;;  %v89_v27 = vld [vmem:[#allocation5] sm:$0xff]  ;;  %v91_v29 = vld [vmem:[#allocation5 + $0x10] sm:$0xff] }
  0x18   :  { %1241 = vmatmul.msk.f32.vlgmr.msra.gmra.mxu1 %vm156_vm0, %v150_v8  ;;  %v90_v28 = vld [vmem:[#allocation5 + $0x8] sm:$0xff]  ;;  %v92_v30 = vld [vmem:[#allocation5 + $0x18] sm:$0xff]  ;;  %v1630_v43 = vld [vmem:[%s2153_s6] sm:$0xff] }
  0x19   :  { %130 = vmatpush.msra.mxu0 %v99_v9  ;;  %v1635_v44 = vld [vmem:[%s2153_s6 + $0x20] sm:$0xff]  ;;  %v1644_v45 = vld [vmem:[%s2153_s6 + $0x8] sm:$0xff]  ;;  %v1658_v47 = vld [vmem:[%s2153_s6 + $0x10] sm:$0xff] }
  0x1a   :  { %v1649_v46 = vld [vmem:[%s2153_s6 + $0x28] sm:$0xff]  ;;  %v1663_v48 = vld [vmem:[%s2153_s6 + $0x30] sm:$0xff]  ;;  %v1672_v49 = vld [vmem:[%s2153_s6 + $0x18] sm:$0xff] }
  0x1b   :  { %131 = vmatpush.msra.mxu0 %v98_v10  ;;  %v1677_v50 = vld [vmem:[%s2153_s6 + $0x38] sm:$0xff]  ;;  %v333_v52 = vld [vmem:[%s2154_s7 + $0x70] sm:$0xff]  ;;  %v332_v55 = vld [vmem:[%s2154_s7 + $0x68] sm:$0xff] }
  0x1c   :  { %v334_v51 = vld [vmem:[%s2154_s7 + $0x78] sm:$0xff]  ;;  %v1278_v54 = vld [vmem:[%s2154_s7 + $0xf0] sm:$0xff]  ;;  %v1277_v56 = vld [vmem:[%s2154_s7 + $0xe8] sm:$0xff] }
  0x1d   :  { %132 = vmatpush.msra.mxu0 %v97_v11  ;;  %v1279_v53 = vld [vmem:[%s2154_s7 + $0xf8] sm:$0xff]  ;;  %v331_v57 = vld [vmem:[%s2154_s7 + $0x60] sm:$0xff]  ;;  %v329_v62 = vld [vmem:[%s2154_s7 + $0x50] sm:$0xff] }
  0x1e   :  { %1237 = vmatmul.msk.f32.vlgmr.msra.gmra.mxu0 %vm104_vm1, %v93_v12  ;;  %v1707_v58 = vld [vmem:[%s2153_s6 + $0x40] sm:$0xff]  ;;  %v330_v60 = vld [vmem:[%s2154_s7 + $0x58] sm:$0xff]  ;;  %v1274_v63 = vld [vmem:[%s2154_s7 + $0xd0] sm:$0xff] }
  0x1f   :  { %427 = vmatpush.msrb.mxu0 %v334_v51  ;;  %v1276_v59 = vld [vmem:[%s2154_s7 + $0xe0] sm:$0xff]  ;;  %v1275_v61 = vld [vmem:[%s2154_s7 + $0xd8] sm:$0xff]  ;;  %v328_v0 = vld [vmem:[%s2154_s7 + $0x48] sm:$0xff] }
  0x20   :  { %1242 = vmatmul.msk.f32.gmra.mxu1 %vm156_vm0, %v151_v13  ;;  %v1273_v1 = vld [vmem:[%s2154_s7 + $0xc8] sm:$0xff]  ;;  %v327_v2 = vld [vmem:[%s2154_s7 + $0x40] sm:$0xff]  ;;  %v326_v5 = vld [vmem:[%s2154_s7 + $0x38] sm:$0xff] }
  0x21   :  { %428 = vmatpush.msrb.mxu0 %v333_v52  ;;  %v1738_v3 = vld [vmem:[%s2153_s6 + $0x48] sm:$0xff]  ;;  %v1272_v4 = vld [vmem:[%s2154_s7 + $0xc0] sm:$0xff]  ;;  %v1271_v6 = vld [vmem:[%s2154_s7 + $0xb8] sm:$0xff] }
  0x22   :  { %v325_v7 = vld [vmem:[%s2154_s7 + $0x30] sm:$0xff]  ;;  %v324_v9 = vld [vmem:[%s2154_s7 + $0x28] sm:$0xff]  ;;  %v323_v11 = vld [vmem:[%s2154_s7 + $0x20] sm:$0xff] }
  0x23   :  { %429 = vmatpush.msrb.mxu0 %v332_v55  ;;  %v1270_v8 = vld [vmem:[%s2154_s7 + $0xb0] sm:$0xff]  ;;  %v1269_v10 = vld [vmem:[%s2154_s7 + $0xa8] sm:$0xff]  ;;  %v1268_v13 = vld [vmem:[%s2154_s7 + $0xa0] sm:$0xff] }
  0x24   :  { %v1769_v12 = vld [vmem:[%s2153_s6 + $0x50] sm:$0xff] }
  0x25   :  { %430 = vmatpush.msrb.mxu0 %v331_v57 }
  0x26   :  { %1238 = vmatmul.msk.f32.gmra.mxu0 %vm104_vm1, %v94_v14  ;;  %v322_v14 = vld [vmem:[%s2154_s7 + $0x18] sm:$0xff] }
  0x27   :  { %431 = vmatpush.msrb.mxu0 %v330_v60  ;;  %v559_v60 = vld [vmem:[%s2156_s9 + $0x38] sm:$0xff] }
  0x29   :  { %432 = vmatpush.msrb.mxu0 %v329_v62  ;;  %v557_v62 = vld [vmem:[%s2156_s9 + $0x28] sm:$0xff] }
  0x2b   :  { %433 = vmatpush.msrb.mxu0 %v328_v0  ;;  %v555_v0 = vld [vmem:[%s2156_s9 + $0x18] sm:$0xff] }
  0x2d   :  { %434 = vmatpush.msrb.mxu0 %v327_v2  ;;  %v553_v2 = vld [vmem:[%s2156_s9 + $0x8] sm:$0xff] }
  0x2e   :  { %1239 = vmatmul.msk.f32.gmra.mxu0 %vm104_vm1, %v95_v15  ;;  %v321_v15 = vld [vmem:[%s2154_s7 + $0x10] sm:$0xff] }
  0x2f   :  { %435 = vmatpush.msrb.mxu0 %v326_v5 }
  0x31   :  { %436 = vmatpush.msrb.mxu0 %v325_v7 }
  0x33   :  { %437 = vmatpush.msrb.mxu0 %v324_v9 }
  0x35   :  { %438 = vmatpush.msrb.mxu0 %v323_v11 }
  0x36   :  { %1240 = vmatmul.msk.f32.gmra.mxu0 %vm104_vm1, %v96_v16  ;;  %v320_v16 = vld [vmem:[%s2154_s7 + $0x8] sm:$0xff] }
  0x37   :  { %439 = vmatpush.msrb.mxu0 %v322_v14 }
  0x39   :  { %440 = vmatpush.msrb.mxu0 %v321_v15 }
  0x3b   :  { %441 = vmatpush.msrb.mxu0 %v320_v16 }
  0x95   :  { %v180_v17 = vpop.f32.mrf.mxu1 }
  0x9b   :  { %v134_v18 = vpop.f32.mrf.mxu0 }
  0x9d   :  { %v183_v19 = vpop.f32.mrf.mxu1 }
  0x9e   :  { %213 = vmatpush.msra.mxu2 %v183_v19  ;;  %1368 = vmatpush.msra.mxu3 %v183_v19  ;;  %v319_v19 = vld [vmem:[%s2154_s7] sm:$0xff] }
  0x9f   :  { %442 = vmatpush.msrb.mxu0 %v319_v19 }
  0xa0   :  { %214 = vmatpush.msra.mxu2 %v180_v17  ;;  %1369 = vmatpush.msra.mxu3 %v180_v17  ;;  %v1788_v17 = vld [vmem:[%s2153_s6 + $0x58] sm:$0xff] }
  0xa1   :  { %1245 = vmatmul.msk.f32.vlgmr.msra.gmra.mxu3 %vm186_vm2, %v148_v20  ;;  %1243 = vmatmul.msk.f32.vlgmr.msra.gmra.mxu2 %vm186_vm2, %v146_v21  ;;  %v1266_v20 = vld [vmem:[%s2154_s7 + $0x90] sm:$0xff]  ;;  %v1303_v21 = vld [vmem:[%s2154_s7 + $0x178] sm:$0xff] }
  0xa2   :  { %640 = vmatpush.msra.mxu0 %v559_v60 }
  0xa3   :  { %v137_v22 = vpop.f32.mrf.mxu0 }
  0xa9   :  { %1246 = vmatmul.msk.f32.gmra.mxu3 %vm186_vm2, %v149_v23  ;;  %1244 = vmatmul.msk.f32.gmra.mxu2 %vm186_vm2, %v147_v24  ;;  %v1302_v23 = vld [vmem:[%s2154_s7 + $0x170] sm:$0xff]  ;;  %v1264_v24 = vld [vmem:[%s2154_s7 + $0x80] sm:$0xff] }
  0xab   :  { %v140_v25 = vpop.f32.mrf.mxu0 }
  0xb3   :  { %v143_v26 = vpop.f32.mrf.mxu0 }
  0xb4   :  { %1247 = vmatpush.msk.msrb.mxu3 %vm241_vm3, %v143_v26  ;;  %v1300_v26 = vld [vmem:[%s2154_s7 + $0x160] sm:$0xff] }
  0xb6   :  { %258 = vmatpush.msrb.mxu3 %v140_v25  ;;  %v1301_v25 = vld [vmem:[%s2154_s7 + $0x168] sm:$0xff] }
  0xb8   :  { %259 = vmatpush.msrb.mxu3 %v137_v22  ;;  %v1265_v22 = vld [vmem:[%s2154_s7 + $0x88] sm:$0xff] }
  0xba   :  { %260 = vmatpush.msrb.mxu3 %v134_v18  ;;  %v1267_v18 = vld [vmem:[%s2154_s7 + $0x98] sm:$0xff] }
  0xbb   :  { %1248 = vmatmul.msk.f32.vlgmr.msrb.gmra.mxu3 %vm228_vm4, %v89_v27  ;;  %v1299_v27 = vld [vmem:[%s2154_s7 + $0x158] sm:$0xff] }
  0xbc   :  { %398 = vmatpush.msra.mxu3 %v1279_v53 }
  0xbe   :  { %399 = vmatpush.msra.mxu3 %v1278_v54 }
  0xc0   :  { %400 = vmatpush.msra.mxu3 %v1277_v56 }
  0xc2   :  { %401 = vmatpush.msra.mxu3 %v1276_v59 }
  0xc3   :  { %1249 = vmatmul.msk.f32.gmra.mxu3 %vm228_vm4, %v90_v28  ;;  %v1298_v28 = vld [vmem:[%s2154_s7 + $0x150] sm:$0xff] }
  0xc4   :  { %402 = vmatpush.msra.mxu3 %v1275_v61  ;;  %v558_v61 = vld [vmem:[%s2156_s9 + $0x30] sm:$0xff] }
  0xc5   :  { %641 = vmatpush.msra.mxu0 %v558_v61 }
  0xc6   :  { %403 = vmatpush.msra.mxu3 %v1274_v63  ;;  %v556_v63 = vld [vmem:[%s2156_s9 + $0x20] sm:$0xff] }
  0xc7   :  { %642 = vmatpush.msra.mxu0 %v557_v62 }
  0xc8   :  { %404 = vmatpush.msra.mxu3 %v1273_v1  ;;  %v554_v1 = vld [vmem:[%s2156_s9 + $0x10] sm:$0xff] }
  0xc9   :  { %643 = vmatpush.msra.mxu0 %v556_v63 }
  0xca   :  { %405 = vmatpush.msra.mxu3 %v1272_v4  ;;  %v552_v4 = vld [vmem:[%s2156_s9] sm:$0xff] }
  0xcb   :  { %1250 = vmatmul.msk.f32.gmra.mxu3 %vm228_vm4, %v91_v29  ;;  %v1297_v29 = vld [vmem:[%s2154_s7 + $0x148] sm:$0xff]  ;;  %644 = vmatpush.msra.mxu0 %v555_v0 }
  0xcc   :  { %406 = vmatpush.msra.mxu3 %v1271_v6 }
  0xcd   :  { %645 = vmatpush.msra.mxu0 %v554_v1 }
  0xce   :  { %407 = vmatpush.msra.mxu3 %v1270_v8 }
  0xcf   :  { %646 = vmatpush.msra.mxu0 %v553_v2 }
  0xd0   :  { %408 = vmatpush.msra.mxu3 %v1269_v10 }
  0xd1   :  { %647 = vmatpush.msra.mxu0 %v552_v4 }
  0xd2   :  { %409 = vmatpush.msra.mxu3 %v1268_v13 }
  0xd3   :  { %1251 = vmatmul.msk.f32.gmra.mxu3 %vm228_vm4, %v92_v30  ;;  %v1296_v30 = vld [vmem:[%s2154_s7 + $0x140] sm:$0xff] }
  0xd4   :  { %410 = vmatpush.msra.mxu3 %v1267_v18 }
  0xd6   :  { %411 = vmatpush.msra.mxu3 %v1266_v20 }
  0xd8   :  { %412 = vmatpush.msra.mxu3 %v1265_v22 }
  0xda   :  { %413 = vmatpush.msra.mxu3 %v1264_v24 }
  0xdc   :  { %581 = vmatpush.msrb.mxu3 %v559_v60 }
  0xde   :  { %582 = vmatpush.msrb.mxu3 %v558_v61 }
  0xe0   :  { %583 = vmatpush.msrb.mxu3 %v557_v62 }
  0xe2   :  { %584 = vmatpush.msrb.mxu3 %v556_v63 }
  0xe4   :  { %585 = vmatpush.msrb.mxu3 %v555_v0 }
  0xe6   :  { %586 = vmatpush.msrb.mxu3 %v554_v1 }
  0xe8   :  { %587 = vmatpush.msrb.mxu3 %v553_v2 }
  0xea   :  { %588 = vmatpush.msrb.mxu3 %v552_v4 }
 0x124   :  { %v222_v31 = vpop.f32.mrf.mxu3  ;;  %v216_v35 = vpop.f32.mrf.mxu2 }
 0x12c   :  { %v225_v32 = vpop.f32.mrf.mxu3  ;;  %v219_v39 = vpop.f32.mrf.mxu2 }
 0x13e   :  { %v262_v33 = vpop.f32.mrf.mxu3 }
 0x13f   :  { %v263_v42 = vadd.f32 %v262_v33, %v216_v35  ;;  %v1293_v33 = vld [vmem:[%s2154_s7 + $0x128] sm:$0xff]  ;;  %v1291_v35 = vld [vmem:[%s2154_s7 + $0x118] sm:$0xff] }
 0x146   :  { %v265_v34 = vpop.f32.mrf.mxu3 }
 0x147   :  { %v266_v41 = vadd.f32 %v265_v34, %v219_v39  ;;  %v1292_v34 = vld [vmem:[%s2154_s7 + $0x120] sm:$0xff] }
 0x148   :  { %v1288_v39 = vld [vmem:[%s2154_s7 + $0x100] sm:$0xff] }
 0x14e   :  { %v268_v36 = vpop.f32.mrf.mxu3 }
 0x14f   :  { %v269_v40 = vadd.f32 %v268_v36, %v222_v31  ;;  %v1295_v31 = vld [vmem:[%s2154_s7 + $0x138] sm:$0xff]  ;;  %v1290_v36 = vld [vmem:[%s2154_s7 + $0x110] sm:$0xff] }
 0x156   :  { %v271_v37 = vpop.f32.mrf.mxu3 }
 0x157   :  { %v272_v38 = vadd.f32 %v271_v37, %v225_v32  ;;  %v1294_v32 = vld [vmem:[%s2154_s7 + $0x130] sm:$0xff]  ;;  %v1289_v37 = vld [vmem:[%s2154_s7 + $0x108] sm:$0xff] }
 0x159   :  { %302 = vmatpush.msrb.mxu1 %v272_v38  ;;  %364 = vmatpush.msrb.mxu2 %v272_v38 }
 0x15b   :  { %303 = vmatpush.msrb.mxu1 %v269_v40  ;;  %365 = vmatpush.msrb.mxu2 %v269_v40 }
 0x15d   :  { %304 = vmatpush.msrb.mxu1 %v266_v41  ;;  %366 = vmatpush.msrb.mxu2 %v266_v41 }
 0x15f   :  { %305 = vmatpush.msrb.mxu1 %v263_v42  ;;  %367 = vmatpush.msrb.mxu2 %v263_v42 }
 0x160   :  { %1252 = vmatmul.msk.f32.vlgmr.msrb.gmra.mxu1 %vm156_vm0, %v1630_v43  ;;  %1260 = vmatmul.msk.f32.vlgmr.msrb.gmra.mxu2 %vm156_vm0, %v1635_v44 }
 0x161   :  { %485 = vmatpush.msra.mxu1 %v272_v38  ;;  %519 = vmatpush.msra.mxu2 %v1303_v21 }
 0x163   :  { %486 = vmatpush.msra.mxu1 %v269_v40  ;;  %520 = vmatpush.msra.mxu2 %v1302_v23 }
 0x165   :  { %487 = vmatpush.msra.mxu1 %v266_v41  ;;  %521 = vmatpush.msra.mxu2 %v1301_v25 }
 0x167   :  { %488 = vmatpush.msra.mxu1 %v263_v42  ;;  %522 = vmatpush.msra.mxu2 %v1300_v26 }
 0x168   :  { %1253 = vmatmul.msk.f32.gmra.mxu1 %vm156_vm0, %v1644_v45  ;;  %1261 = vmatmul.msk.f32.gmra.mxu2 %vm156_vm0, %v1649_v46 }
 0x169   :  { %523 = vmatpush.msra.mxu2 %v1299_v27 }
 0x16b   :  { %524 = vmatpush.msra.mxu2 %v1298_v28 }
 0x16d   :  { %525 = vmatpush.msra.mxu2 %v1297_v29 }
 0x16f   :  { %526 = vmatpush.msra.mxu2 %v1296_v30 }
 0x170   :  { %1254 = vmatmul.msk.f32.gmra.mxu1 %vm156_vm0, %v1658_v47  ;;  %1262 = vmatmul.msk.f32.gmra.mxu2 %vm156_vm0, %v1663_v48 }
 0x171   :  { %527 = vmatpush.msra.mxu2 %v1295_v31 }
 0x173   :  { %528 = vmatpush.msra.mxu2 %v1294_v32 }
 0x175   :  { %529 = vmatpush.msra.mxu2 %v1293_v33 }
 0x177   :  { %530 = vmatpush.msra.mxu2 %v1292_v34 }
 0x178   :  { %1255 = vmatmul.msk.f32.gmra.mxu1 %vm156_vm0, %v1672_v49  ;;  %1263 = vmatmul.msk.f32.gmra.mxu2 %vm156_vm0, %v1677_v50 }
 0x179   :  { %531 = vmatpush.msra.mxu2 %v1291_v35 }
 0x17b   :  { %532 = vmatpush.msra.mxu2 %v1290_v36 }
 0x17d   :  { %533 = vmatpush.msra.mxu2 %v1289_v37 }
 0x17f   :  { %534 = vmatpush.msra.mxu2 %v1288_v39 }
 0x180   :  { %1284 = vmatmul.msk.f32.vlgmr.msra.gmra.mxu1 %vm156_vm0, %v1707_v58 }
 0x188   :  { %1285 = vmatmul.msk.f32.gmra.mxu1 %vm156_vm0, %v1738_v3 }
 0x190   :  { %1286 = vmatmul.msk.f32.gmra.mxu1 %vm156_vm0, %v1769_v12 }
 0x198   :  { %1287 = vmatmul.msk.f32.gmra.mxu1 %vm156_vm0, %v1788_v17 }
 0x1dd   :  { %v307_v38 = vpop.f32.mrf.mxu1 }
 0x1de   :  { %443 = vmatmul.f32.vlgmr.msrb.gmra.mxu0 %v307_v38 }
 0x1e3   :  { %v369_v40 = vpop.f32.mrf.mxu2 }
 0x1e4   :  { %414 = vmatmul.f32.vlgmr.msra.gmra.mxu3 %v369_v40 }
 0x1e5   :  { %v310_v41 = vpop.f32.mrf.mxu1 }
 0x1e6   :  { %446 = vmatmul.f32.gmra.mxu0 %v310_v41 }
 0x1eb   :  { %v372_v42 = vpop.f32.mrf.mxu2 }
 0x1ec   :  { %417 = vmatmul.f32.gmra.mxu3 %v372_v42 }
 0x1ed   :  { %v313_v51 = vpop.f32.mrf.mxu1 }
 0x1ee   :  { %449 = vmatmul.f32.gmra.mxu0 %v313_v51 }
 0x1f3   :  { %v375_v52 = vpop.f32.mrf.mxu2 }
 0x1f4   :  { %420 = vmatmul.f32.gmra.mxu3 %v375_v52 }
 0x1f5   :  { %v316_v53 = vpop.f32.mrf.mxu1 }
 0x1f6   :  { %452 = vmatmul.f32.gmra.mxu0 %v316_v53 }
 0x1fb   :  { %v378_v54 = vpop.f32.mrf.mxu2 }
 0x1fc   :  { %423 = vmatmul.f32.gmra.mxu3 %v378_v54 }
 0x1fd   :  { %v490_v55 = vpop.f32.mrf.mxu1 }
 0x1fe   :  { %535 = vmatmul.f32.vlgmr.msra.gmra.mxu2 %v490_v55 }
 0x205   :  { %v493_v56 = vpop.f32.mrf.mxu1 }
 0x206   :  { %538 = vmatmul.f32.gmra.mxu2 %v493_v56 }
 0x20d   :  { %v496_v57 = vpop.f32.mrf.mxu1 }
 0x20e   :  { %541 = vmatmul.f32.gmra.mxu2 %v496_v57 }
 0x215   :  { %v499_v59 = vpop.f32.mrf.mxu1 }
 0x216   :  { %544 = vmatmul.f32.gmra.mxu2 %v499_v59 }
 0x25b   :  { %v444_v6 = vpop.f32.mrf.mxu0 }
 0x263   :  { %v447_v11 = vpop.f32.mrf.mxu0 }
 0x267   :  { %v415_v5 = vpop.f32.mrf.mxu3 }
 0x268   :  { %v445_v7 = vadd.f32 %v444_v6, %v415_v5 }
 0x26b   :  { %v450_v20 = vpop.f32.mrf.mxu0 }
 0x26f   :  { %v418_v8 = vpop.f32.mrf.mxu3 }
 0x270   :  { %v448_v14 = vadd.f32 %v447_v11, %v418_v8 }
 0x273   :  { %v453_v26 = vpop.f32.mrf.mxu0 }
 0x277   :  { %v421_v18 = vpop.f32.mrf.mxu3 }
 0x278   :  { %v451_v21 = vadd.f32 %v450_v20, %v421_v18 }
 0x27f   :  { %v424_v25 = vpop.f32.mrf.mxu3 }
 0x280   :  { %v454_v27 = vadd.f32 %v453_v26, %v424_v25 }
 0x281   :  { %v536_v9 = vpop.f32.mrf.mxu2 }
 0x282   :  { %v1879_v10 = vadd.f32 %v536_v9, %v445_v7 }
 0x284   :  { %v616_v13 = vmul.f32 %v1879_v10, %v1879_v10  ;;  %1304 = vmatmul.msk.f32.vlgmr.msrb.gmra.mxu3 %vm560_vm5, %v1879_v10 }
 0x286   :  { %1308 = vmatmul.msk.f32.vlgmr.msra.gmra.mxu0 %vm560_vm5, %v616_v13 }
 0x289   :  { %v539_v15 = vpop.f32.mrf.mxu2 }
 0x28a   :  { %v1886_v16 = vadd.f32 %v539_v15, %v448_v14 }
 0x28c   :  { %1305 = vmatmul.msk.f32.gmra.mxu3 %vm560_vm5, %v1886_v16  ;;  %v617_v19 = vmul.f32 %v1886_v16, %v1886_v16 }
 0x28e   :  { %1309 = vmatmul.msk.f32.gmra.mxu0 %vm560_vm5, %v617_v19 }
 0x291   :  { %v542_v22 = vpop.f32.mrf.mxu2 }
 0x292   :  { %v1893_v23 = vadd.f32 %v542_v22, %v451_v21 }
 0x294   :  { %1306 = vmatmul.msk.f32.gmra.mxu3 %vm560_vm5, %v1893_v23  ;;  %v618_v24 = vmul.f32 %v1893_v23, %v1893_v23 }
 0x296   :  { %1310 = vmatmul.msk.f32.gmra.mxu0 %vm560_vm5, %v618_v24 }
 0x299   :  { %v545_v28 = vpop.f32.mrf.mxu2 }
 0x29a   :  { %v551_v29 = vadd.f32 %v545_v28, %v454_v27  ;;  %v1375_v28 = vld [vmem:[%s2158_s11] ss:$0 sm:$0xff] }
 0x29c   :  { %1307 = vmatmul.msk.f32.gmra.mxu3 %vm560_vm5, %v551_v29  ;;  %v619_v30 = vmul.f32 %v551_v29, %v551_v29 }
 0x29e   :  { %1311 = vmatmul.msk.f32.gmra.mxu0 %vm560_vm5, %v619_v30 }
 0x303   :  { %v649_v31 = vpop.f32.mrf.mxu0 }
 0x304   :  { %v661_v38 = vsel %vm560_vm5, %v649_v31, 0.0 }
 0x307   :  { %v590_v32 = vpop.f32.mrf.mxu3 }
 0x308   :  { %v602_v52 = vsel %vm560_vm5, %v590_v32, 0.0 }
 0x30b   :  { %v652_v33 = vpop.f32.mrf.mxu0 }
 0x30c   :  { %v662_v36 = vsel %vm560_vm5, %v652_v33, 0.0 }
 0x30d   :  { %v663_v40 = vadd.f32 %v662_v36, %v661_v38 }
 0x30f   :  { %v593_v34 = vpop.f32.mrf.mxu3 }
 0x310   :  { %v603_v41 = vsel %vm560_vm5, %v593_v34, 0.0 }
 0x311   :  { %v604_v55 = vadd.f32 %v603_v41, %v602_v52 }
 0x313   :  { %v655_v35 = vpop.f32.mrf.mxu0 }
 0x314   :  { %v664_v39 = vsel %vm560_vm5, %v655_v35, 0.0  ;;  %v1376_v35 = vld [vmem:[%s2159_s12] ss:$0 sm:$0xff]  ;;  %s1223_s12 = sshll.u32 %s2164_s17, 4  ;;  %s1224_s12 = int_to_ptr.hbm [resolvable:$true] %s1223_s12 }
 0x315   :  { %v665_v42 = vadd.f32 %v664_v39, %v663_v40 }
 0x317   :  { %v596_v37 = vpop.f32.mrf.mxu3 }
 0x318   :  { %v605_v53 = vsel %vm560_vm5, %v596_v37, 0.0 }
 0x319   :  { %v606_v57 = vadd.f32 %v605_v53, %v604_v55  ;;  %v748_v55 = vld [vmem:[%s2155_s8 + $0x18] sm:$0xff] }
 0x31b   :  { %v658_v51 = vpop.f32.mrf.mxu0 }
 0x31c   :  { %v666_v54 = vsel %vm560_vm5, %v658_v51, 0.0 }
 0x31d   :  { %v667_v56 = vadd.f32 %v666_v54, %v665_v42 }
 0x31f   :  { %v668_v59 = vrot.slane %v667_v56, 4  ;;  %v599_v60 = vpop.f32.mrf.mxu3 }
 0x320   :  { %v607_v61 = vsel %vm560_vm5, %v599_v60, 0.0  ;;  %v1347_v60 = vld [vmem:[%s2155_s8 + $0xb8] sm:$0xff] }
 0x321   :  { %v669_v62 = vadd.f32 %v668_v59, %v667_v56  ;;  %v608_v63 = vadd.f32 %v607_v61, %v606_v57  ;;  %v747_v56 = vld [vmem:[%s2155_s8 + $0x10] sm:$0xff]  ;;  %v746_v57 = vld [vmem:[%s2155_s8 + $0x8] sm:$0xff]  ;;  %v745_v59 = vld [vmem:[%s2155_s8] sm:$0xff] }
 0x322   :  { %v1346_v61 = vld [vmem:[%s2155_s8 + $0xb0] sm:$0xff] }
 0x323   :  { %v670_v0 = vrot.slane %v669_v62, 2  ;;  %v609_v1 = vrot.slane %v608_v63, 4 }
 0x325   :  { %v671_v2 = vadd.f32 %v670_v0, %v669_v62  ;;  %v610_v4 = vadd.f32 %v609_v1, %v608_v63  ;;  %v1345_v62 = vld [vmem:[%s2155_s8 + $0xa8] sm:$0xff]  ;;  %v1344_v63 = vld [vmem:[%s2155_s8 + $0xa0] sm:$0xff]  ;;  %v1343_v0 = vld [vmem:[%s2155_s8 + $0x98] sm:$0xff] }
 0x326   :  { %v1342_v1 = vld [vmem:[%s2155_s8 + $0x90] sm:$0xff] }
 0x327   :  { %v611_v5 = vrot.slane %v610_v4, 2  ;;  %v672_v6 = vrot.slane %v671_v2, 1 }
 0x329   :  { %v612_v7 = vadd.f32 %v611_v5, %v610_v4  ;;  %v673_v9 = vadd.f32 %v672_v6, %v671_v2  ;;  %v1341_v2 = vld [vmem:[%s2155_s8 + $0x88] sm:$0xff]  ;;  %v1340_v5 = vld [vmem:[%s2155_s8 + $0x80] sm:$0xff] }
 0x32b   :  { %v613_v8 = vrot.slane %v612_v7, 1  ;;  %v674_v14 = vmul.f32 0.03125, %v673_v9 }
 0x32d   :  { %v614_v11 = vadd.f32 %v613_v8, %v612_v7 }
 0x32f   :  { %v615_v13 = vmul.f32 0.03125, %v614_v11 }
 0x331   :  { %v675_v15 = vmul.f32 %v615_v13, %v615_v13  ;;  %v680_v27 = vsub.f32 %v551_v29, %v615_v13  ;;  %v679_v30 = vsub.f32 %v1893_v23, %v615_v13  ;;  %v678_v31 = vsub.f32 %v1886_v16, %v615_v13 }
 0x332   :  { %v677_v32 = vsub.f32 %v1879_v10, %v615_v13 }
 0x333   :  { %v676_v18 = vsub.f32 %v674_v14, %v675_v15 }
 0x335   :  { %v681_v19 = vadd.f32 1e-05, %v676_v18 }
 0x337   :  { %1379 = vrsqrt.f32 %v681_v19  ;;  %vm688_vm7 = vweird.f32 %v681_v19 }
 0x33d   :  { %v1380_v20 = vpop.eup %1379 }
 0x33e   :  { %v683_v21 = vmul.f32 %v1380_v20, %v681_v19  ;;  %vm689_vm6 = vweird.f32 %v1380_v20 }
 0x33f   :  { %vm690_vm8 = vmor %vm688_vm7, %vm689_vm6 }
 0x340   :  { %v684_v22 = vmul.f32 %v1380_v20, %v683_v21  ;;  %v963_v21 = vld [vmem:[%s2157_s10 + $0x38] sm:$0xff] }
 0x342   :  { %v685_v24 = vmul.f32 0.5, %v684_v22  ;;  %v962_v22 = vld [vmem:[%s2157_s10 + $0x30] sm:$0xff] }
 0x344   :  { %v686_v25 = vsub.f32 1.5, %v685_v24  ;;  %v961_v24 = vld [vmem:[%s2157_s10 + $0x28] sm:$0xff] }
 0x346   :  { %v687_v26 = vmul.f32 %v1380_v20, %v686_v25  ;;  %v960_v25 = vld [vmem:[%s2157_s10 + $0x20] sm:$0xff] }
 0x348   :  { %v691_v33 = vsel %vm690_vm8, %v1380_v20, %v687_v26  ;;  %v959_v26 = vld [vmem:[%s2157_s10 + $0x18] sm:$0xff] }
 0x349   :  { %v695_v34 = vmul.f32 %v691_v33, %v680_v27  ;;  %v694_v36 = vmul.f32 %v691_v33, %v679_v30  ;;  %v693_v37 = vmul.f32 %v691_v33, %v678_v31  ;;  %v692_v29 = vmul.f32 %v691_v33, %v677_v32  ;;  %v958_v27 = vld [vmem:[%s2157_s10 + $0x10] sm:$0xff]  ;;  %v956_v30 = vld [vmem:[%s2157_s10] sm:$0xff] }
 0x34b   :  { %v703_v38 = vmul.f32 %v1375_v28, %v695_v34  ;;  %v702_v39 = vmul.f32 %v1375_v28, %v694_v36  ;;  %v701_v40 = vmul.f32 %v1375_v28, %v693_v37  ;;  %v700_v51 = vmul.f32 %v1375_v28, %v692_v29  ;;  %v957_v28 = vld [vmem:[%s2157_s10 + $0x8] sm:$0xff] }
 0x34d   :  { %v711_v41 = vadd.f32 %v1376_v35, %v703_v38  ;;  %v710_v42 = vadd.f32 %v1376_v35, %v702_v39  ;;  %v709_v52 = vadd.f32 %v1376_v35, %v701_v40  ;;  %v708_v16 = vadd.f32 %v1376_v35, %v700_v51 }
 0x34f   :  { %v715_v23 = vmax.f32 %v711_v41, 0.0  ;;  %v714_v10 = vmax.f32 %v710_v42, 0.0  ;;  %v713_v53 = vmax.f32 %v709_v52, 0.0  ;;  %v712_v54 = vmax.f32 %v708_v16, 0.0 }
 0x351   :  { %728 = vmatpush.msrb.mxu1 %v715_v23  ;;  %765 = vmatpush.msrb.mxu2 %v715_v23 }
 0x353   :  { %729 = vmatpush.msrb.mxu1 %v714_v10  ;;  %766 = vmatpush.msrb.mxu2 %v714_v10 }
 0x355   :  { %730 = vmatpush.msrb.mxu1 %v713_v53  ;;  %767 = vmatpush.msrb.mxu2 %v713_v53 }
 0x357   :  { %731 = vmatpush.msrb.mxu1 %v712_v54  ;;  %768 = vmatpush.msrb.mxu2 %v712_v54 }
 0x358   :  { %1312 = vmatmul.msk.f32.vlgmr.msrb.gmra.mxu1 %vm156_vm0, %v1630_v43  ;;  %1316 = vmatmul.msk.f32.vlgmr.msrb.gmra.mxu2 %vm156_vm0, %v1635_v44  ;;  %v752_v43 = vld [vmem:[%s2155_s8 + $0x38] sm:$0xff]  ;;  %v751_v44 = vld [vmem:[%s2155_s8 + $0x30] sm:$0xff] }
 0x359   :  { %885 = vmatpush.msra.mxu1 %v715_v23  ;;  %852 = vmatpush.msrb.mxu0 %v752_v43 }
 0x35a   :  { %931 = vmatpush.msra.mxu2 %v1347_v60 }
 0x35b   :  { %886 = vmatpush.msra.mxu1 %v714_v10  ;;  %853 = vmatpush.msrb.mxu0 %v751_v44 }
 0x35c   :  { %932 = vmatpush.msra.mxu2 %v1346_v61 }
 0x35d   :  { %887 = vmatpush.msra.mxu1 %v713_v53 }
 0x35e   :  { %933 = vmatpush.msra.mxu2 %v1345_v62 }
 0x35f   :  { %888 = vmatpush.msra.mxu1 %v712_v54 }
 0x360   :  { %1313 = vmatmul.msk.f32.gmra.mxu1 %vm156_vm0, %v1644_v45  ;;  %1317 = vmatmul.msk.f32.gmra.mxu2 %vm156_vm0, %v1649_v46  ;;  %v1327_v45 = vld [vmem:[%s2155_s8 + $0x78] sm:$0xff]  ;;  %v1326_v46 = vld [vmem:[%s2155_s8 + $0x70] sm:$0xff] }
 0x361   :  { %811 = vmatpush.msra.mxu3 %v1327_v45  ;;  %934 = vmatpush.msra.mxu2 %v1344_v63 }
 0x363   :  { %812 = vmatpush.msra.mxu3 %v1326_v46  ;;  %935 = vmatpush.msra.mxu2 %v1343_v0 }
 0x365   :  { %936 = vmatpush.msra.mxu2 %v1342_v1 }
 0x367   :  { %937 = vmatpush.msra.mxu2 %v1341_v2  ;;  %v1130_v2 = vld [vmem:[%s2162_s15 + $0x38] sm:$0xff] }
 0x368   :  { %1314 = vmatmul.msk.f32.gmra.mxu1 %vm156_vm0, %v1658_v47  ;;  %1318 = vmatmul.msk.f32.gmra.mxu2 %vm156_vm0, %v1663_v48  ;;  %v750_v47 = vld [vmem:[%s2155_s8 + $0x28] sm:$0xff] }
 0x369   :  { %v1325_v48 = vld [vmem:[%s2155_s8 + $0x68] sm:$0xff]  ;;  %854 = vmatpush.msrb.mxu0 %v750_v47  ;;  %938 = vmatpush.msra.mxu2 %v1340_v5 }
 0x36a   :  { %813 = vmatpush.msra.mxu3 %v1325_v48  ;;  %1151 = vmatpush.msrb.mxu1 %v1130_v2  ;;  %v1121_v2 = vld [vmem:[%s2163_s16 + $0x10] sm:$0xff] }
 0x370   :  { %1315 = vmatmul.msk.f32.gmra.mxu1 %vm156_vm0, %v1672_v49  ;;  %1319 = vmatmul.msk.f32.gmra.mxu2 %vm156_vm0, %v1677_v50  ;;  %v749_v49 = vld [vmem:[%s2155_s8 + $0x20] sm:$0xff] }
 0x371   :  { %v1324_v50 = vld [vmem:[%s2155_s8 + $0x60] sm:$0xff]  ;;  %855 = vmatpush.msrb.mxu0 %v749_v49 }
 0x372   :  { %814 = vmatpush.msra.mxu3 %v1324_v50 }
 0x373   :  { %856 = vmatpush.msrb.mxu0 %v748_v55 }
 0x375   :  { %857 = vmatpush.msrb.mxu0 %v747_v56 }
 0x377   :  { %858 = vmatpush.msrb.mxu0 %v746_v57 }
 0x378   :  { %1336 = vmatmul.msk.f32.vlgmr.msra.gmra.mxu1 %vm156_vm0, %v1707_v58  ;;  %v1323_v58 = vld [vmem:[%s2155_s8 + $0x58] sm:$0xff] }
 0x379   :  { %815 = vmatpush.msra.mxu3 %v1323_v58  ;;  %859 = vmatpush.msrb.mxu0 %v745_v59 }
 0x37b   :  { %1043 = vmatpush.msra.mxu0 %v963_v21 }
 0x37d   :  { %1044 = vmatpush.msra.mxu0 %v962_v22 }
 0x37f   :  { %1045 = vmatpush.msra.mxu0 %v961_v24 }
 0x380   :  { %1337 = vmatmul.msk.f32.gmra.mxu1 %vm156_vm0, %v1738_v3  ;;  %v1322_v3 = vld [vmem:[%s2155_s8 + $0x50] sm:$0xff] }
 0x381   :  { %816 = vmatpush.msra.mxu3 %v1322_v3  ;;  %1046 = vmatpush.msra.mxu0 %v960_v25 }
 0x383   :  { %1047 = vmatpush.msra.mxu0 %v959_v26 }
 0x385   :  { %1048 = vmatpush.msra.mxu0 %v958_v27 }
 0x387   :  { %1049 = vmatpush.msra.mxu0 %v957_v28 }
 0x388   :  { %1338 = vmatmul.msk.f32.gmra.mxu1 %vm156_vm0, %v1769_v12  ;;  %v1321_v12 = vld [vmem:[%s2155_s8 + $0x48] sm:$0xff] }
 0x389   :  { %817 = vmatpush.msra.mxu3 %v1321_v12  ;;  %1050 = vmatpush.msra.mxu0 %v956_v30 }
 0x390   :  { %1339 = vmatmul.msk.f32.gmra.mxu1 %vm156_vm0, %v1788_v17  ;;  %v1320_v17 = vld [vmem:[%s2155_s8 + $0x40] sm:$0xff] }
 0x391   :  { %818 = vmatpush.msra.mxu3 %v1320_v17 }
 0x393   :  { %984 = vmatpush.msrb.mxu3 %v963_v21 }
 0x395   :  { %985 = vmatpush.msrb.mxu3 %v962_v22  ;;  %v1125_v22 = vld [vmem:[%s2162_s15 + $0x10] sm:$0xff] }
 0x397   :  { %986 = vmatpush.msrb.mxu3 %v961_v24 }
 0x399   :  { %987 = vmatpush.msrb.mxu3 %v960_v25  ;;  %v1124_v25 = vld [vmem:[%s2162_s15 + $0x8] sm:$0xff] }
 0x39b   :  { %988 = vmatpush.msrb.mxu3 %v959_v26 }
 0x39d   :  { %989 = vmatpush.msrb.mxu3 %v958_v27 }
 0x39f   :  { %990 = vmatpush.msrb.mxu3 %v957_v28  ;;  %v1123_v28 = vld [vmem:[%s2162_s15] sm:$0xff] }
 0x3a1   :  { %991 = vmatpush.msrb.mxu3 %v956_v30 }
 0x3d5   :  { %v733_v4 = vpop.f32.mrf.mxu1 }
 0x3d6   :  { %1332 = vmatmul.msk.f32.vlgmr.msrb.gmra.mxu0 %vm560_vm5, %v733_v4  ;;  %v1129_v4 = vld [vmem:[%s2162_s15 + $0x30] sm:$0xff] }
 0x3d7   :  { %1152 = vmatpush.msrb.mxu1 %v1129_v4  ;;  %v1122_v4 = vld [vmem:[%s2163_s16 + $0x18] sm:$0xff] }
 0x3db   :  { %v770_v6 = vpop.f32.mrf.mxu2 }
 0x3dc   :  { %1328 = vmatmul.msk.f32.vlgmr.msra.gmra.mxu3 %vm560_vm5, %v770_v6 }
 0x3dd   :  { %v736_v7 = vpop.f32.mrf.mxu1 }
 0x3de   :  { %1333 = vmatmul.msk.f32.gmra.mxu0 %vm560_vm5, %v736_v7 }
 0x3e3   :  { %v773_v8 = vpop.f32.mrf.mxu2 }
 0x3e4   :  { %1329 = vmatmul.msk.f32.gmra.mxu3 %vm560_vm5, %v773_v8 }
 0x3e5   :  { %v739_v9 = vpop.f32.mrf.mxu1 }
 0x3e6   :  { %1334 = vmatmul.msk.f32.gmra.mxu0 %vm560_vm5, %v739_v9  ;;  %v1128_v9 = vld [vmem:[%s2162_s15 + $0x28] sm:$0xff] }
 0x3e7   :  { %1153 = vmatpush.msrb.mxu1 %v1128_v9 }
 0x3eb   :  { %v776_v11 = vpop.f32.mrf.mxu2 }
 0x3ec   :  { %1330 = vmatmul.msk.f32.gmra.mxu3 %vm560_vm5, %v776_v11 }
 0x3ed   :  { %v742_v13 = vpop.f32.mrf.mxu1 }
 0x3ee   :  { %1335 = vmatmul.msk.f32.gmra.mxu0 %vm560_vm5, %v742_v13 }
 0x3f3   :  { %v779_v14 = vpop.f32.mrf.mxu2 }
 0x3f4   :  { %1331 = vmatmul.msk.f32.gmra.mxu3 %vm560_vm5, %v779_v14  ;;  %v1127_v14 = vld [vmem:[%s2162_s15 + $0x20] sm:$0xff] }
 0x3f5   :  { %v890_v15 = vpop.f32.mrf.mxu1  ;;  %1154 = vmatpush.msrb.mxu1 %v1127_v14 }
 0x3f6   :  { %1348 = vmatmul.msk.f32.vlgmr.msra.gmra.mxu2 %vm560_vm5, %v890_v15 }
 0x3fd   :  { %v893_v18 = vpop.f32.mrf.mxu1 }
 0x3fe   :  { %1349 = vmatmul.msk.f32.gmra.mxu2 %vm560_vm5, %v893_v18 }
 0x405   :  { %v896_v19 = vpop.f32.mrf.mxu1 }
 0x406   :  { %1350 = vmatmul.msk.f32.gmra.mxu2 %vm560_vm5, %v896_v19  ;;  %v1126_v19 = vld [vmem:[%s2162_s15 + $0x18] sm:$0xff] }
 0x407   :  { %1155 = vmatpush.msrb.mxu1 %v1126_v19 }
 0x409   :  { %1156 = vmatpush.msrb.mxu1 %v1125_v22 }
 0x40b   :  { %1157 = vmatpush.msrb.mxu1 %v1124_v25 }
 0x40d   :  { %v899_v20 = vpop.f32.mrf.mxu1  ;;  %1158 = vmatpush.msrb.mxu1 %v1123_v28 }
 0x40e   :  { %1351 = vmatmul.msk.f32.gmra.mxu2 %vm560_vm5, %v899_v20 }
 0x453   :  { %v861_v32 = vpop.f32.mrf.mxu0 }
 0x45b   :  { %v864_v37 = vpop.f32.mrf.mxu0 }
 0x45f   :  { %v820_v31 = vpop.f32.mrf.mxu3 }
 0x460   :  { %v862_v33 = vadd.f32 %v861_v32, %v820_v31 }
 0x463   :  { %v867_v51 = vpop.f32.mrf.mxu0 }
 0x467   :  { %v823_v34 = vpop.f32.mrf.mxu3 }
 0x468   :  { %v865_v38 = vadd.f32 %v864_v37, %v823_v34 }
 0x46b   :  { %v870_v54 = vpop.f32.mrf.mxu0 }
 0x46f   :  { %v826_v41 = vpop.f32.mrf.mxu3 }
 0x470   :  { %v868_v23 = vadd.f32 %v867_v51, %v826_v41 }
 0x477   :  { %v829_v53 = vpop.f32.mrf.mxu3 }
 0x478   :  { %v871_v43 = vadd.f32 %v870_v54, %v829_v53 }
 0x479   :  { %v940_v35 = vpop.f32.mrf.mxu2 }
 0x47a   :  { %v2051_v36 = vadd.f32 %v940_v35, %v862_v33 }
 0x47c   :  { %v1019_v29 = vmul.f32 %v2051_v36, %v2051_v36  ;;  %1352 = vmatmul.msk.f32.vlgmr.msrb.gmra.mxu3 %vm560_vm5, %v2051_v36 }
 0x47e   :  { %1356 = vmatmul.msk.f32.vlgmr.msra.gmra.mxu0 %vm560_vm5, %v1019_v29 }
 0x481   :  { %v943_v39 = vpop.f32.mrf.mxu2 }
 0x482   :  { %v2058_v40 = vadd.f32 %v943_v39, %v865_v38 }
 0x484   :  { %1353 = vmatmul.msk.f32.gmra.mxu3 %vm560_vm5, %v2058_v40  ;;  %v1020_v42 = vmul.f32 %v2058_v40, %v2058_v40 }
 0x486   :  { %1357 = vmatmul.msk.f32.gmra.mxu0 %vm560_vm5, %v1020_v42 }
 0x489   :  { %v946_v52 = vpop.f32.mrf.mxu2 }
 0x48a   :  { %v2065_v10 = vadd.f32 %v946_v52, %v868_v23 }
 0x48c   :  { %1354 = vmatmul.msk.f32.gmra.mxu3 %vm560_vm5, %v2065_v10  ;;  %v1021_v16 = vmul.f32 %v2065_v10, %v2065_v10 }
 0x48e   :  { %1358 = vmatmul.msk.f32.gmra.mxu0 %vm560_vm5, %v1021_v16  ;;  %v1377_v16 = vld [vmem:[%s2160_s13] ss:$0 sm:$0xff] }
 0x491   :  { %v949_v44 = vpop.f32.mrf.mxu2 }
 0x492   :  { %v2072_v45 = vadd.f32 %v949_v44, %v871_v43  ;;  %v1378_v43 = vld [vmem:[%s2161_s14] ss:$0 sm:$0xff] }
 0x494   :  { %1355 = vmatmul.msk.f32.gmra.mxu3 %vm560_vm5, %v2072_v45  ;;  %v1022_v46 = vmul.f32 %v2072_v45, %v2072_v45 }
 0x496   :  { %1359 = vmatmul.msk.f32.gmra.mxu0 %vm560_vm5, %v1022_v46 }
 0x4fb   :  { %v1052_v47 = vpop.f32.mrf.mxu0 }
 0x4fc   :  { %v1064_v58 = vsel %vm560_vm5, %v1052_v47, 0.0 }
 0x4ff   :  { %v993_v48 = vpop.f32.mrf.mxu3 }
 0x500   :  { %v1005_v61 = vsel %vm560_vm5, %v993_v48, 0.0 }
 0x503   :  { %v1055_v49 = vpop.f32.mrf.mxu0 }
 0x504   :  { %v1065_v56 = vsel %vm560_vm5, %v1055_v49, 0.0 }
 0x505   :  { %v1066_v3 = vadd.f32 %v1065_v56, %v1064_v58 }
 0x507   :  { %v996_v50 = vpop.f32.mrf.mxu3 }
 0x508   :  { %v1006_v12 = vsel %vm560_vm5, %v996_v50, 0.0 }
 0x509   :  { %v1007_v0 = vadd.f32 %v1006_v12, %v1005_v61 }
 0x50b   :  { %v1058_v55 = vpop.f32.mrf.mxu0 }
 0x50c   :  { %v1067_v59 = vsel %vm560_vm5, %v1058_v55, 0.0 }
 0x50d   :  { %v1068_v17 = vadd.f32 %v1067_v59, %v1066_v3 }
 0x50f   :  { %v999_v57 = vpop.f32.mrf.mxu3 }
 0x510   :  { %v1008_v62 = vsel %vm560_vm5, %v999_v57, 0.0 }
 0x511   :  { %v1009_v5 = vadd.f32 %v1008_v62, %v1007_v0 }
 0x513   :  { %v1061_v60 = vpop.f32.mrf.mxu0 }
 0x514   :  { %v1069_v63 = vsel %vm560_vm5, %v1061_v60, 0.0 }
 0x515   :  { %v1070_v1 = vadd.f32 %v1069_v63, %v1068_v17 }
 0x517   :  { %v1071_v6 = vrot.slane %v1070_v1, 4  ;;  %v1002_v7 = vpop.f32.mrf.mxu3 }
 0x518   :  { %v1010_v8 = vsel %vm560_vm5, %v1002_v7, 0.0 }
 0x519   :  { %v1072_v11 = vadd.f32 %v1071_v6, %v1070_v1  ;;  %v1011_v13 = vadd.f32 %v1010_v8, %v1009_v5  ;;  %v1120_v1 = vld [vmem:[%s2163_s16 + $0x8] sm:$0xff] }
 0x51b   :  { %v1073_v15 = vrot.slane %v1072_v11, 2  ;;  %v1012_v18 = vrot.slane %v1011_v13, 4 }
 0x51d   :  { %v1074_v20 = vadd.f32 %v1073_v15, %v1072_v11  ;;  %v1013_v21 = vadd.f32 %v1012_v18, %v1011_v13 }
 0x51f   :  { %v1014_v24 = vrot.slane %v1013_v21, 2  ;;  %v1075_v26 = vrot.slane %v1074_v20, 1 }
 0x521   :  { %v1015_v27 = vadd.f32 %v1014_v24, %v1013_v21  ;;  %v1076_v31 = vadd.f32 %v1075_v26, %v1074_v20 }
 0x523   :  { %v1016_v30 = vrot.slane %v1015_v27, 1  ;;  %v1077_v34 = vmul.f32 0.03125, %v1076_v31 }
 0x525   :  { %v1017_v32 = vadd.f32 %v1016_v30, %v1015_v27 }
 0x527   :  { %v1018_v33 = vmul.f32 0.03125, %v1017_v32 }
 0x529   :  { %v1078_v35 = vmul.f32 %v1018_v33, %v1018_v33  ;;  %v1080_v52 = vsub.f32 %v2051_v36, %v1018_v33  ;;  %v1081_v44 = vsub.f32 %v2058_v40, %v1018_v33  ;;  %v1082_v36 = vsub.f32 %v2065_v10, %v1018_v33 }
 0x52a   :  { %v1083_v59 = vsub.f32 %v2072_v45, %v1018_v33  ;;  %v1119_v45 = vld [vmem:[%s2163_s16] sm:$0xff] }
 0x52b   :  { %v1079_v37 = vsub.f32 %v1077_v34, %v1078_v35 }
 0x52d   :  { %v1084_v29 = vadd.f32 1e-05, %v1079_v37 }
 0x52f   :  { %1381 = vrsqrt.f32 %v1084_v29  ;;  %vm1091_vm10 = vweird.f32 %v1084_v29 }
 0x535   :  { %v1382_v38 = vpop.eup %1381 }
 0x536   :  { %v1086_v39 = vmul.f32 %v1382_v38, %v1084_v29  ;;  %vm1092_vm9 = vweird.f32 %v1382_v38 }
 0x537   :  { %vm1093_vm11 = vmor %vm1091_vm10, %vm1092_vm9 }
 0x538   :  { %v1087_v41 = vmul.f32 %v1382_v38, %v1086_v39 }
 0x53a   :  { %v1088_v42 = vmul.f32 0.5, %v1087_v41 }
 0x53c   :  { %v1089_v51 = vsub.f32 1.5, %v1088_v42 }
 0x53e   :  { %v1090_v23 = vmul.f32 %v1382_v38, %v1089_v51 }
 0x540   :  { %v1094_v53 = vsel %vm1093_vm11, %v1382_v38, %v1090_v23 }
 0x541   :  { %v1095_v54 = vmul.f32 %v1094_v53, %v1080_v52  ;;  %v1096_v47 = vmul.f32 %v1094_v53, %v1081_v44  ;;  %v1097_v56 = vmul.f32 %v1094_v53, %v1082_v36  ;;  %v1098_v12 = vmul.f32 %v1094_v53, %v1083_v59 }
 0x543   :  { %v1103_v46 = vmul.f32 %v1377_v16, %v1095_v54  ;;  %v1104_v50 = vmul.f32 %v1377_v16, %v1096_v47  ;;  %v1105_v58 = vmul.f32 %v1377_v16, %v1097_v56  ;;  %v1106_v17 = vmul.f32 %v1377_v16, %v1098_v12 }
 0x545   :  { %v1111_v48 = vadd.f32 %v1378_v43, %v1103_v46  ;;  %v1112_v55 = vadd.f32 %v1378_v43, %v1104_v50  ;;  %v1113_v3 = vadd.f32 %v1378_v43, %v1105_v58  ;;  %v1114_v60 = vadd.f32 %v1378_v43, %v1106_v17 }
 0x547   :  { %v1115_v49 = vmax.f32 %v1111_v48, 0.0  ;;  %v1116_v57 = vmax.f32 %v1112_v55, 0.0  ;;  %v1117_v40 = vmax.f32 %v1113_v3, 0.0  ;;  %v1118_v61 = vmax.f32 %v1114_v60, 0.0 }
 0x549   :  { %1360 = vmatmul.msk.f32.vlgmr.msrb.gmra.mxu1 %vm560_vm5, %v1115_v49 }
 0x551   :  { %1361 = vmatmul.msk.f32.gmra.mxu1 %vm560_vm5, %v1116_v57 }
 0x559   :  { %1362 = vmatmul.msk.f32.gmra.mxu1 %vm560_vm5, %v1117_v40 }
 0x561   :  { %1363 = vmatmul.msk.f32.gmra.mxu1 %vm560_vm5, %v1118_v61 }
 0x5c6   :  { %v1160_v62 = vpop.f32.mrf.mxu1 }
 0x5ce   :  { %v1163_v10 = vpop.f32.mrf.mxu1 }
 0x5d6   :  { %v1166_v63 = vpop.f32.mrf.mxu1 }
 0x5de   :  { %v1169_v0 = vpop.f32.mrf.mxu1 }
 0x5df   :  { %1196 = vmatpush.msrb.mxu2 %v1169_v0 }
 0x5e1   :  { %1197 = vmatpush.msrb.mxu2 %v1166_v63 }
 0x5e3   :  { %1198 = vmatpush.msrb.mxu2 %v1163_v10 }
 0x5e5   :  { %1199 = vmatpush.msrb.mxu2 %v1160_v62 }
 0x5e6   :  { %1364 = vmatmul.msk.f32.vlgmr.msrb.gmra.mxu2 %vm156_vm0, %v1119_v45 }
 0x5ee   :  { %1365 = vmatmul.msk.f32.gmra.mxu2 %vm156_vm0, %v1120_v1 }
 0x5f6   :  { %1366 = vmatmul.msk.f32.gmra.mxu2 %vm156_vm0, %v1121_v2 }
 0x5fe   :  { %1367 = vmatmul.msk.f32.gmra.mxu2 %vm156_vm0, %v1122_v4 }
 0x669   :  { %v1201_v5 = vpop.f32.mrf.mxu2 }
 0x66a   :  { %1213 = vst [vmem:[#allocation7] sm:$0xff] %v1201_v5 }
 0x671   :  { %v1204_v6 = vpop.f32.mrf.mxu2 }
 0x672   :  { %1214 = vst [vmem:[#allocation7 + $0x8] sm:$0xff] %v1204_v6 }
 0x679   :  { %v1207_v7 = vpop.f32.mrf.mxu2 }
 0x67a   :  { %1215 = vst [vmem:[#allocation7 + $0x10] sm:$0xff] %v1207_v7 }
 0x681   :  { %v1210_v8 = vpop.f32.mrf.mxu2 }
 0x682   :  { %1216 = vst [vmem:[#allocation7 + $0x18] sm:$0xff] %v1210_v8 }
 0x683   :  { %1229 = dma.vmem_to_hbm [thread:$0]  %s1222_s27, 512, %s1224_s12, [#allocation4], %s1462_s19, %s1462_s19, %s1463_s1  }
 0x684   :  { %1459 = dma.done.wait [#allocation4], 512  }
 0x685   :  { %1460 = vsyncadd [#allocation4], 4294966784 }
 0x686   :  { %1234 = vsyncpa [#allocation3], 1 }
 0x687   :  { %1235 = vsyncpa [#allocation6], 1 }
 0x688   :  { %1236 = vsyncpa [#allocation4], 1 }

</bundles_post_ra>
